<compile_context>
chip_gen: v6e
topology: v6e:2x2x1
jax: 0.10.0
libtpu: 0.0.40
codegen_flags: <defaults>
</compile_context>

<pallas_src>
import math
import functools

import jax
import jax.numpy as jnp
from jax.experimental import pallas as pl
from jax.experimental.pallas import tpu as pltpu


def _pick_tile(n, max_tile=512, base=128):
    """Largest multiple of `base` that divides n, capped at max_tile (else n)."""
    best = None
    cand = base
    while cand <= min(n, max_tile):
        if n % cand == 0:
            best = cand
        cand += base
    return best if best is not None else n


# ----------------------------------------------------------------------------
# Kernel 1: negative pairwise squared distance (kNN metric in feature space)
#   neg_dist[i, j] = -||x_i - x_j||^2 = 2 x_i.x_j - |x_i|^2 - |x_j|^2
# Tiled over (batch, query tile, key tile); |x|^2 precomputed in JAX.
# ----------------------------------------------------------------------------
def _pairwise_kernel(xi_ref, xj_ref, sqc_ref, sqr_ref, o_ref):
    xi = xi_ref[0]                                           # (C, TI) f32
    xj = xj_ref[0]                                           # (C, TJ) f32
    # Contract the channel axis directly -- no explicit transpose before the MXU.
    inner = jax.lax.dot_general(
        xi, xj, (((0,), (0,)), ((), ())),
        preferred_element_type=jnp.float32)                  # (TI, TJ)
    o_ref[0] = (2.0 * inner - sqc_ref[0] - sqr_ref[0]).astype(o_ref.dtype)


def pairwise_neg_dist(x, *, ti=None, tj=None):
    B, C, N = x.shape
    ti = ti or _pick_tile(N, max_tile=256)
    tj = tj or _pick_tile(N, max_tile=512)

    sq = jnp.sum(x * x, axis=1)                              # (B, N), computed once
    sq_col = sq[:, :, None]                                  # (B, N, 1) query norms
    sq_row = sq[:, None, :]                                  # (B, 1, N) key norms

    return pl.pallas_call(
        _pairwise_kernel,
        out_shape=jax.ShapeDtypeStruct((B, N, N), jnp.float32),
        grid=(B, N // ti, N // tj),
        in_specs=[
            pl.BlockSpec((1, C, ti), lambda b, i, j: (b, 0, i)),   # query tile
            pl.BlockSpec((1, C, tj), lambda b, i, j: (b, 0, j)),   # key tile
            pl.BlockSpec((1, ti, 1), lambda b, i, j: (b, i, 0)),   # |x_i|^2 column
            pl.BlockSpec((1, 1, tj), lambda b, i, j: (b, 0, j)),   # |x_j|^2 row
        ],
        out_specs=pl.BlockSpec((1, ti, tj), lambda b, i, j: (b, i, j)),
        compiler_params=pltpu.CompilerParams(
            dimension_semantics=("parallel", "parallel", "parallel")),
    )(x, x, sq_col, sq_row)


# ----------------------------------------------------------------------------
# Kernel 2: fused (q/k/v 1x1 conv + head split + neighbor attention + row std)
#
# Per grid step (one batch, one point tile TN), with N on lanes / K on sublanes:
#   z       = Aw @ x_b                        (H*C, TN)  Aw = (Wk_h^T Wq_h)/sqrt(dq)
#   energy_h[k, n] = sum_c z[h*C+c, n] * diff[c, k, n]          == q_h . k_h
#   attn_h  = softmax_K(energy_h)
#   std_h   = population-std_K(attn_h)        (H, TN)    one dense store
#   out     = Wv_blockdiag @ stack_h(sum_K attn_h * diff)   (v_out, TN) one store
# ----------------------------------------------------------------------------
def _fused_group_attn_kernel(aw_ref, wv_ref, x_ref, diff_ref, out_ref, std_ref,
                             *, num_heads):
    _, C, K, TN = diff_ref.shape
    H = num_heads

    xb = x_ref[0]                                            # (C, TN) f32
    aw = aw_ref[...]                                         # (H*C, C) f32 (scale folded)
    wv = wv_ref[...]                                         # (v_out, H*C) block-diagonal

    # Fused q-conv + k-conv: one MXU matmul instead of two convs + 5-D splits.
    z = jnp.dot(aw, xb, preferred_element_type=jnp.float32)  # (H*C, TN)

    # Neighbor 'diff' features: bf16 in HBM/VMEM, upcast once to f32 for math.
    diff = diff_ref[0].astype(jnp.float32)                   # (C, K, TN)

    # ---- pass 1: attention energies for all heads, channel-outer so each
    #      (K, TN) slice of diff feeds the whole head group -----------------
    # TODO(synk): for large H*C or TN switch these unrolled loops to
    # lax.fori_loop with pl.ds slices so vreg live ranges stay bounded.
    energy = [jnp.zeros((K, TN), jnp.float32) for _ in range(H)]
    for c in range(C):
        d_c = diff[c]                                        # (K, TN)
        for h in range(H):
            z_row = z[h * C + c:h * C + c + 1, :]            # (1, TN), sublane bcast
            energy[h] = energy[h] + d_c * z_row

    # ---- softmax over K + per-point attention-row std (population std,
    #      matching torch.std(..., unbiased=False)); std(e/s) == std(e)/s ----
    inv_k = 1.0 / K
    attn = []
    std_rows = []
    for h in range(H):
        e_h = energy[h]
        e_h = e_h - jnp.max(e_h, axis=0, keepdims=True)
        e = jnp.exp(e_h)                                     # (K, TN)
        s = jnp.sum(e, axis=0, keepdims=True)                # (1, TN)
        # single-pass variance, reusing s for the mean
        mean_e = s * inv_k
        msq = jnp.sum(e * e, axis=0, keepdims=True) * inv_k
        var = jnp.maximum(msq - mean_e * mean_e, 0.0)
        std_rows.append(jnp.sqrt(var) / s)        # exact divide: stable top-M order
        attn.append(e * pl.reciprocal(s, approx=True))       # EUP reciprocal (value path)

    # one dense (H, TN) store instead of H masked single-row stores
    std_ref[0] = jnp.concatenate(std_rows, axis=0).astype(std_ref.dtype)

    # ---- pass 2: attention-weighted neighbor sums stacked to (H*C, TN) so the
    #      fused v-conv is ONE block-diagonal matmul and ONE dense store ------
    sv = [jnp.sum(diff * attn[h][None, :, :], axis=1) for h in range(H)]  # H x (C, TN)
    sv_all = jnp.concatenate(sv, axis=0)                     # (H*C, TN)
    out = jnp.dot(wv, sv_all, preferred_element_type=jnp.float32)   # (v_out, TN)
    out_ref[0] = out.astype(out_ref.dtype)


def fused_group_attention(x, diff, Wq, Wk, Wv, num_heads, *, tn=None):
    B, C, N = x.shape
    K = diff.shape[2]
    H = num_heads
    q_out, k_out, v_out = Wq.shape[0], Wk.shape[0], Wv.shape[0]
    dq, dk, dv = q_out // H, k_out // H, v_out // H

    # Point-axis tile: multiple of 128 (lane-dense stores), capped so the
    # per-step working set (diff block + f32 temporaries) stays well inside the
    # default scoped VMEM of v5e/v6e/v7x and the vreg file is not thrashed.
    tn = tn or _pick_tile(N, max_tile=256)

    # Fold the q/k 1x1 convs (and the 1/sqrt(dq) scale) into one per-head
    # bilinear form:  energy_h[k, n] = x[:, n]^T (Wk_h^T Wq_h) diff[:, k, n] / sqrt(dq)
    Aw = jnp.einsum("hdc,hde->hce",
                    Wk.reshape(H, dk, C),
                    Wq.reshape(H, dq, C)) / math.sqrt(dq)
    Aw = Aw.reshape(H * C, C).astype(jnp.float32)

    # Block-diagonal v-conv weights: out = Wv_bd @ [sv_0; sv_1; ...; sv_{H-1}]
    Wv_h = Wv.reshape(H, dv, C)
    Wv_bd = jnp.zeros((v_out, H * C), jnp.float32)
    for h in range(H):
        Wv_bd = Wv_bd.at[h * dv:(h + 1) * dv, h * C:(h + 1) * C].set(Wv_h[h])

    kernel = functools.partial(_fused_group_attn_kernel, num_heads=H)
    out, std = pl.pallas_call(
        kernel,
        out_shape=(jax.ShapeDtypeStruct((B, v_out, N), jnp.float32),
                   jax.ShapeDtypeStruct((B, H, N), jnp.float32)),
        grid=(B, N // tn),
        in_specs=[
            pl.BlockSpec((H * C, C), lambda b, j: (0, 0)),          # Aw (weights)
            pl.BlockSpec((v_out, H * C), lambda b, j: (0, 0)),      # Wv block-diag
            pl.BlockSpec((1, C, tn), lambda b, j: (b, 0, j)),       # center points
            pl.BlockSpec((1, C, K, tn), lambda b, j: (b, 0, 0, j)), # neighbor diffs (bf16)
        ],
        out_specs=(pl.BlockSpec((1, v_out, tn), lambda b, j: (b, 0, j)),
                   pl.BlockSpec((1, H, tn), lambda b, j: (b, 0, j))),
        compiler_params=pltpu.CompilerParams(
            dimension_semantics=("parallel", "parallel")),
    )(Aw, Wv_bd, x, diff)
    return out, std


# ----------------------------------------------------------------------------
# Plain-JAX glue and reference paths.
# ----------------------------------------------------------------------------
def reference_neg_dist(x):
    inner = jnp.einsum("bcn,bcm->bnm", x, x)
    sq = jnp.sum(x * x, axis=1)
    return 2.0 * inner - sq[:, :, None] - sq[:, None, :]


def group_diff(x, knn_idx, dtype=jnp.bfloat16):
    """ops.group(x, K, 'diff') neighbor features, gathered as (B, C, K, N).

    Stored as bf16: halves the HBM bytes of the dominant K-times-sized tensor.
    """
    # TODO(synk): fuse this gather into the attention kernel (scalar-prefetch
    # knn_idx + in-kernel gather from a resident x tile) to avoid materializing
    # diff in HBM at all; skipped here because a general lane-axis gather is
    # not portably supported by the Mosaic lowering.
    idx_t = jnp.transpose(knn_idx, (0, 2, 1))                # (B, K, N) -- tiny
    nb = jax.vmap(lambda xb, ib: xb[:, ib])(x, idx_t)        # (B, C, K, N)
    return (nb - x[:, :, None, :]).astype(dtype)


def reference_group_attention(x, diff, Wq, Wk, Wv, num_heads):
    """Plain-JAX restatement of conv + split_heads + attention (PyTorch order)."""
    B, C, N = x.shape
    K = diff.shape[2]
    H = num_heads
    dq, dk, dv = Wq.shape[0] // H, Wk.shape[0] // H, Wv.shape[0] // H
    diff = diff.astype(jnp.float32)
    q = jnp.einsum("oc,bcn->bon", Wq, x).reshape(B, H, dq, N)
    kf = jnp.einsum("oc,bckn->bokn", Wk, diff).reshape(B, H, dk, K, N)
    vf = jnp.einsum("oc,bckn->bokn", Wv, diff).reshape(B, H, dv, K, N)
    energy = jnp.einsum("bhdn,bhdkn->bhkn", q, kf) / math.sqrt(dq)
    attn = jax.nn.softmax(energy, axis=2)
    std = jnp.std(attn, axis=2)                              # population std (B,H,N)
    out = jnp.einsum("bhkn,bhdkn->bhdn", attn, vf)           # (B,H,dv,N)
    return out.reshape(B, H * dv, N), std


def select_and_gather(out_bvn, std, M, v_depth):
    """top-M / bottom-(N-M) selection by attention-row std + channel gather."""
    B, v_out, N = out_bvn.shape
    idx = jax.lax.top_k(std, M)[1]                           # (B, H, M)
    idx_dropped = jax.lax.top_k(-std, N - M)[1]              # (B, H, N-M)

    def gather(sel_idx):
        gi = jnp.repeat(sel_idx, v_depth, axis=1)            # (B, v_out, S)
        return jnp.take_along_axis(out_bvn, gi, axis=2)      # (B, v_out, S)

    return (gather(idx), idx), (gather(idx_dropped), idx_dropped)


def down_sample_with_sigma(x, Wq, Wk, Wv, M, K, num_heads, use_pallas=True):
    """Forward pass of DownSampleWithSigma (channels-first point features)."""
    # TODO(synk): assumes v_out == k_out (standard config); the torch.gather
    # truncation behaviour when v_out != k_out is not reproduced.
    v_depth = Wv.shape[0] // num_heads

    neg_dist = pairwise_neg_dist(x) if use_pallas else reference_neg_dist(x)
    knn_idx = jax.lax.top_k(neg_dist, K)[1]                  # (B, N, K)
    diff = group_diff(x, knn_idx)                            # (B, C, K, N) bf16

    attn_fn = fused_group_attention if use_pallas else reference_group_attention
    out_bvn, std = attn_fn(x, diff, Wq, Wk, Wv, num_heads)   # (B,v_out,N), (B,H,N)
    return select_and_gather(out_bvn, std, M, v_depth)


if __name__ == "__main__":
    # Module config: the module hardcodes K = 32, so N >= 32.  N is a multiple
    # of 128 so every kernel tile / store is lane-dense.
    B, C, N = 2, 8, 128
    q_out = k_out = v_out = 16
    num_heads = 4
    M = 32
    K = 32

    key = jax.random.PRNGKey(0)
    kx, kq, kk, kv = jax.random.split(key, 4)
    x = jax.random.normal(kx, (B, C, N), jnp.float32)
    # Conv2d(in, out, 1, bias=False) weights, squeezed to (out, in): w[:, :, 0, 0]
    Wq = 0.2 * jax.random.normal(kq, (q_out, C), jnp.float32)
    Wk = 0.2 * jax.random.normal(kk, (k_out, C), jnp.float32)
    Wv = 0.2 * jax.random.normal(kv, (v_out, C), jnp.float32)

    # ---- end-to-end forward with the Pallas kernels ----
    (v_down, idx), (v_dropped, idx_dropped) = down_sample_with_sigma(
        x, Wq, Wk, Wv, M, K, num_heads, use_pallas=True)
    jax.block_until_ready((v_down, idx, v_dropped, idx_dropped))

    assert v_down.shape == (B, v_out, M)
    assert v_dropped.shape == (B, v_out, N - M)
    assert idx.shape == (B, num_heads, M)
    assert idx_dropped.shape == (B, num_heads, N - M)

    # ---- stage-level checks against a plain-JAX reference (tolerance based so
    #      float noise in discrete top-k tie-breaks cannot flake the test) ----
    neg_p = pairwise_neg_dist(x)
    neg_r = reference_neg_dist(x)
    assert jnp.allclose(neg_p, neg_r, atol=1e-3, rtol=1e-3)

    knn_idx = jax.lax.top_k(neg_p, K)[1]
    diff = group_diff(x, knn_idx)                            # bf16, shared by both paths
    out_p, std_p = fused_group_attention(x, diff, Wq, Wk, Wv, num_heads)
    out_r, std_r = reference_group_attention(x, diff, Wq, Wk, Wv, num_heads)
    assert jnp.allclose(std_p, std_r, atol=1e-4, rtol=1e-3)
    assert jnp.allclose(out_p, out_r, atol=5e-3, rtol=5e-3)

    # ---- end-to-end value check using the (shared) selected indices ----
    gi = jnp.repeat(idx, v_out // num_heads, axis=1)
    v_down_check = jnp.take_along_axis(out_r, gi, axis=2)
    assert jnp.allclose(v_down, v_down_check, atol=5e-3, rtol=5e-3)

    print("KERNEL_OK")
</pallas_src>

<mosaic_0001>
module attributes {stable_mosaic.version = 11 : i64} {
  func.func @_pairwise_kernel(%arg0: i32, %arg1: i32, %arg2: i32, %arg3: memref<1x8x128xf32, #tpu.memory_space<vmem>>, %arg4: memref<1x8x128xf32, #tpu.memory_space<vmem>>, %arg5: memref<1x128x1xf32, #tpu.memory_space<vmem>>, %arg6: memref<1x1x128xf32, #tpu.memory_space<vmem>>, %arg7: memref<1x128x128xf32, #tpu.memory_space<vmem>>) attributes {dimension_semantics = [#tpu.dimension_semantics<parallel>, #tpu.dimension_semantics<parallel>, #tpu.dimension_semantics<parallel>], iteration_bounds = array<i64: 2, 1, 1>, scalar_prefetch = 0 : i64, scratch_operands = 0 : i64, tpu.core_type = #tpu.core_type<tc>, window_params = [{transform_indices = @transform_0, window_bounds = array<i64: 1, 8, 128>}, {transform_indices = @transform_1, window_bounds = array<i64: 1, 8, 128>}, {transform_indices = @transform_2, window_bounds = array<i64: 1, 128, 1>}, {transform_indices = @transform_3, window_bounds = array<i64: 1, 1, 128>}, {transform_indices = @transform_4, window_bounds = array<i64: 1, 128, 128>}]} {
    %c0 = arith.constant 0 : index
    %c0_0 = arith.constant 0 : index
    %c0_1 = arith.constant 0 : index
    %0 = vector.load %arg3[%c0, %c0_0, %c0_1] : memref<1x8x128xf32, #tpu.memory_space<vmem>>, vector<1x8x128xf32>
    %1 = vector.shape_cast %0 : vector<1x8x128xf32> to vector<8x128xf32>
    %c0_2 = arith.constant 0 : index
    %c0_3 = arith.constant 0 : index
    %c0_4 = arith.constant 0 : index
    %2 = vector.load %arg4[%c0_2, %c0_3, %c0_4] : memref<1x8x128xf32, #tpu.memory_space<vmem>>, vector<1x8x128xf32>
    %3 = vector.shape_cast %2 : vector<1x8x128xf32> to vector<8x128xf32>
    %cst = arith.constant dense<0.000000e+00> : vector<128x128xf32>
    %4 = tpu.matmul %1, %3, %cst {dimension_numbers = #tpu.dot_dimension_numbers<[0], [0], [1], [1], [0, 1, 1, 1], [], []>} : vector<8x128xf32>, vector<8x128xf32>, vector<128x128xf32> -> vector<128x128xf32>
    %cst_5 = arith.constant 2.000000e+00 : f32
    %5 = vector.broadcast %cst_5 : f32 to vector<128x128xf32>
    %6 = arith.mulf %5, %4 : vector<128x128xf32>
    %c0_6 = arith.constant 0 : index
    %c0_7 = arith.constant 0 : index
    %c0_8 = arith.constant 0 : index
    %7 = vector.load %arg5[%c0_6, %c0_7, %c0_8] : memref<1x128x1xf32, #tpu.memory_space<vmem>>, vector<1x128x1xf32>
    %8 = vector.shape_cast %7 : vector<1x128x1xf32> to vector<128x1xf32>
    %9 = vector.broadcast %8 : vector<128x1xf32> to vector<128x128xf32>
    %10 = arith.subf %6, %9 : vector<128x128xf32>
    %c0_9 = arith.constant 0 : index
    %c0_10 = arith.constant 0 : index
    %c0_11 = arith.constant 0 : index
    %11 = vector.load %arg6[%c0_9, %c0_10, %c0_11] : memref<1x1x128xf32, #tpu.memory_space<vmem>>, vector<1x1x128xf32>
    %12 = vector.shape_cast %11 : vector<1x1x128xf32> to vector<1x128xf32>
    %13 = vector.broadcast %12 : vector<1x128xf32> to vector<128x128xf32>
    %14 = arith.subf %10, %13 : vector<128x128xf32>
    %c0_12 = arith.constant 0 : index
    %c0_13 = arith.constant 0 : index
    %c0_14 = arith.constant 0 : index
    %15 = vector.load %arg7[%c0_12, %c0_13, %c0_14] : memref<1x128x128xf32, #tpu.memory_space<vmem>>, vector<1x128x128xf32>
    %16 = vector.shape_cast %15 : vector<1x128x128xf32> to vector<128x128xf32>
    %17 = vector.shape_cast %14 : vector<128x128xf32> to vector<1x128x128xf32>
    tpu.vector_store %arg7[%c0_12, %c0_13, %c0_14], %17 {strides = array<i32>} : memref<1x128x128xf32, #tpu.memory_space<vmem>>, vector<1x128x128xf32>,
    return
  }
  func.func @transform_0(%arg0: i32, %arg1: i32, %arg2: i32) -> (i32, i32, i32) {
    %c0_i32 = arith.constant 0 : i32
    %c0_i32_0 = arith.constant 0 : i32
    return %arg0, %c0_i32, %arg1 : i32, i32, i32
  }
  func.func @transform_1(%arg0: i32, %arg1: i32, %arg2: i32) -> (i32, i32, i32) {
    %c0_i32 = arith.constant 0 : i32
    %c0_i32_0 = arith.constant 0 : i32
    return %arg0, %c0_i32, %arg2 : i32, i32, i32
  }
  func.func @transform_2(%arg0: i32, %arg1: i32, %arg2: i32) -> (i32, i32, i32) {
    %c0_i32 = arith.constant 0 : i32
    %c0_i32_0 = arith.constant 0 : i32
    return %arg0, %arg1, %c0_i32 : i32, i32, i32
  }
  func.func @transform_3(%arg0: i32, %arg1: i32, %arg2: i32) -> (i32, i32, i32) {
    %c0_i32 = arith.constant 0 : i32
    %c0_i32_0 = arith.constant 0 : i32
    return %arg0, %c0_i32, %arg2 : i32, i32, i32
  }
  func.func @transform_4(%arg0: i32, %arg1: i32, %arg2: i32) -> (i32, i32, i32) {
    %c0_i32 = arith.constant 0 : i32
    return %arg0, %arg1, %arg2 : i32, i32, i32
  }
}

</mosaic_0001>

<bundles_post_ra>
// kernel: tpu_custom_call.1
= control target key start
LH: loop header
LB: loop body
LE: loop exit
PB: predicated region body
PF: predicated region fallthrough
CT: control target
= control target key end

     0   :  { %9 = vsyncpa [#allocation3], 0  ;;  %s1304_s0 = inlined_call_operand.vmem [shape: f32[2,8,128], index: 0, kind: input, shape index: {}]   ;;  %s1305_s1 = inlined_call_operand.vmem [shape: f32[2,8,128], index: 1, kind: input, shape index: {}]   ;;  %s1306_s2 = inlined_call_operand.vmem [shape: f32[2,128,1], index: 2, kind: input, shape index: {}]   ;;  %s1307_s3 = inlined_call_operand.vmem [shape: f32[2,1,128], index: 3, kind: input, shape index: {}]   ;;  %s1308_s4 = inlined_call_operand.hbm [shape: f32[2,128,128], index: 4, kind: output, shape index: {}]  }
   0x1   :  { %11 = vsyncpa [#allocation3 + $0x1], 0  ;;  %s1101_s15 = smov 0   ;;  %s1103_s16 = smov 0  }
   0x2   :  { %s1105_s17 = smov 0   ;;  %s1107_s18 = smov 0  }
   0x3   :  { %s1109_s19 = smov 0   ;;  %s1111_s20 = smov 0  }
   0x4 LB: > { %s854_s21 = sadd.s32 4294967295, %s1070_s20   ;;  %s855_s22 = sadd.s32 4294967294, %s1070_s20   ;;  %s1070_s20 = sphi %s1111_s20, %s17_s20   ;;  %s1066_s19 = sphi %s1109_s19, %s1315_s19   ;;  %s1062_s18 = sphi %s1107_s18, %s1314_s18   ;;  %s1058_s17 = sphi %s1105_s17, %s1313_s17   ;;  %s1054_s16 = sphi %s1103_s16, %s1312_s16   ;;  %s1050_s15 = sphi %s1101_s15, %s1311_s15  }
   0x5   : > { %s36_s23 = sadd.s32 1, %s1066_s19  ;;  %s159_s24 = sadd.s32 1, %s1058_s17 }
   0x6   : > { %p38_p0 = scmp.ge.s32.totalorder %s36_s23, 2  ;;  %p169_p1 = scmp.ne.s32.totalorder %s1058_s17, %s1054_s16 }
   0x7   : > { %p170_p2 = scmp.eq.s32.totalorder %s854_s21, 1  ;;  %p175_p3 = scmp.ne.s32.totalorder %s1054_s16, %s1050_s15 }
   0x8   : > { %s1317_s23 = smov (%p38_p0, %s36_s23), 0  ;;  %p176_p5 = scmp.eq.s32.totalorder %s855_s22, 1 }
   0x9   : > { %p1141_p4 = por %p170_p2, %p169_p1  ;;  %s152_s26 = ssub.s32 %s1066_s19, %s1317_s23 }
   0xa   : > { %p858_p6 = scmp.ge.s32.totalorder %s1070_s20, 1  ;;  %p157_p7 = scmp.eq.s32.totalorder %s152_s26, 0 }
   0xb   : > { %p1148_p8 = por %p176_p5, %p175_p3  ;;  %p236_p9 = scmp.lt.s32.totalorder %s1070_s20, 3 }
   0xc   : > { %s1154_s28 = scalar_select %p157_p7, %s1058_s17, %s159_s24  }
   0xd   : > { %p237_p10 = pnand %p858_p6, %p236_p9 }
   0xe   : > { %p286_p11 = scmp.lt.s32.totalorder (!%p237_p10), %s1062_s18, 1  ;;  %s283_s21 = sand.u32 (!%p237_p10), 1, %s1054_s16  }
   0xf   : > { %240 = sbr.rel (%p237_p10) target bundleno = 425 (0x1a9), region = 36 }
  0x14   : > { %s1158_s29 = scalar_select %p286_p11, %s1062_s18, 1  ;;  %v1072_v2 = vmov 0   ;;  %vm351_vm0 = vcmask 64512  }
  0x15   : > { %993 = vset.pattern.permute.xlu1 %v1072_v2 }
  0x16   : > { %s860_s30 = sshll.u32 %s1158_s29, 3  ;;  %s886_s11 = sshll.u32 %s1158_s29, 7 }
  0x17   : > { %s292_s7 = scalar_lea.vmem %s1304_s0, %s860_s30  ;;  %s299_s10 = scalar_lea.vmem %s1305_s1, %s860_s30 }
  0x18   : > { %v317_v0 = vld [vmem:[%s292_s7] sm:$0xff]  ;;  %s1171_s14 = scalar_lea.vmem %s1306_s2, %s886_s11  ;;  %s315_s26 = scalar_lea.vmem %s1307_s3, %s1158_s29 }
  0x19   : > { %v318_v1 = vld [vmem:[%s299_s10] sm:$0xff]  ;;  %319 = vxpose.xlu0.b32.start.end [1/1] (short) %v317_v0, 128  ;;  %v562_v3 = vld [vmem:[%s1171_s14 + $0x8] sm:$0xff]  ;;  %v563_v4 = vld [vmem:[%s1171_s14 + $0x10] sm:$0xff]  ;;  %s859_s30 = sshll.u32 %s283_s21, 7  ;;  %s887_s29 = sshll.u32 %s1062_s18, 11 }
  0x1a   : > { %905 = vmatprep.subr.mxu0 %v318_v1  ;;  %931 = vmatprep.subr.mxu1 %v318_v1  ;;  %v564_v5 = vld [vmem:[%s1171_s14 + $0x18] sm:$0xff]  ;;  %v565_v6 = vld [vmem:[%s1171_s14 + $0x20] sm:$0xff]  ;;  %v566_v7 = vld [vmem:[%s1171_s14 + $0x28] sm:$0xff]  ;;  %s1215_s5 = scalar_lea.vmem [#allocation2], %s859_s30  ;;  %s1250_s9 = scalar_lea.hbm %s1308_s4, %s887_s29 }
  0x1b   : > { %906 = vmatpush3.msra.mxu0 %v318_v1  ;;  %932 = vmatpush3.msra.mxu1 %v318_v1  ;;  %v567_v8 = vld [vmem:[%s1171_s14 + $0x30] sm:$0xff]  ;;  %v568_v9 = vld [vmem:[%s1171_s14 + $0x38] sm:$0xff]  ;;  %v569_v10 = vld [vmem:[%s1171_s14 + $0x40] sm:$0xff]  ;;  %s729_s6 = sshll.u32 %s1215_s5, 4  ;;  %s1259_s18 = scalar_lea.sflag [#allocation3], %s283_s21  ;;  %s1252_s6 = int_to_ptr.vmem [resolvable:$true] %s729_s6 }
  0x1c   : > { %584 = vperm.xlu1 %993, %v562_v3   ;;  %v570_v11 = vld [vmem:[%s1171_s14 + $0x48] sm:$0xff]  ;;  %v571_v12 = vld [vmem:[%s1171_s14 + $0x50] sm:$0xff]  ;;  %v572_v13 = vld [vmem:[%s1171_s14 + $0x58] sm:$0xff]  ;;  %s994_s10 = scalar_lea.vmem %s1252_s6, 2048  ;;  %s1073_s11 = smov [#allocation2]  }
  0x1d   : > { %v573_v14 = vld [vmem:[%s1171_s14 + $0x60] sm:$0xff]  ;;  %v574_v15 = vld [vmem:[%s1171_s14 + $0x68] sm:$0xff]  ;;  %v575_v16 = vld [vmem:[%s1171_s14 + $0x70] sm:$0xff]  ;;  %p995_p12 = scmp.ne.s32.totalorder %s1252_s6, %s994_s10  ;;  %s998_s12 = sshll.u32 %s1073_s11, 4  ;;  %s999_s12 = int_to_ptr.vmem [resolvable:$false] %s998_s12 }
  0x1e   : > { %v576_v17 = vld [vmem:[%s1171_s14 + $0x78] sm:$0xff]  ;;  %v561_v18 = vld [vmem:[%s1171_s14] sm:$0xff]  ;;  %s1000_s13 = scalar_lea.vmem %s999_s12, 4096  ;;  %p1001_p1 = scmp.lt.s32.totalorder %s1252_s6, %s999_s12 }
  0x1f   : > { %v1212_v42 = vld [vmem:[%s315_s26] ss:$0 sm:$0xff]  ;;  %p996_p13 = pnand %p995_p12, %p1141_p4  ;;  %p1002_p2 = scmp.lt.s32.totalorder %s1000_s13, %s994_s10 }
  0x20   : > { %589 = vperm.xlu1 %993, %v563_v4  }
  0x21   : > { %p997_p0 = pneg %p996_p13  ;;  %p1003_p3 = por %p1002_p2, %p1001_p1 }
  0x23   : > { %p1004_p5 = pnand %p1003_p3, %p997_p0 }
  0x24   : > { %594 = vperm.xlu1 %993, %v564_v5  }
  0x28   : > { %599 = vperm.xlu1 %993, %v565_v6  }
  0x2c   : > { %604 = vperm.xlu1 %993, %v566_v7  }
  0x30   : > { %609 = vperm.xlu1 %993, %v567_v8  }
  0x34   : > { %614 = vperm.xlu1 %993, %v568_v9  }
  0x38   : > { %619 = vperm.xlu1 %993, %v569_v10  }
  0x3c   : > { %624 = vperm.xlu1 %993, %v570_v11  }
  0x40   : > { %629 = vperm.xlu1 %993, %v571_v12  }
  0x42   : > { %992 = vset.pattern.permute.xlu0 %v1072_v2 }
  0x44   : > { %634 = vperm.xlu1 %993, %v572_v13  }
  0x48   : > { %639 = vperm.xlu1 %993, %v573_v14  }
  0x4c   : > { %644 = vperm.xlu1 %993, %v574_v15  }
  0x50   : > { %649 = vperm.xlu1 %993, %v575_v16  }
  0x54   : > { %654 = vperm.xlu1 %993, %v576_v17  }
  0x7e   : > { %579 = vperm.xlu0 %992, %v561_v18  }
  0x95   : > { %v335_v19 = vpop.trf.xlu0 }
  0x96   : > { %907 = vmatprep.mubr.msk.f32.mxu0 %vm351_vm0, %v335_v19 }
  0x97   : > { %v585_v35 = vpop.permute.xlu1 %584 }
  0x99   : > { %v336_v20 = vpop.trf.xlu0 }
  0x9a   : > { %908 = vmatmul.mubr.msk.f32.vlgmr.msra.gmra.mxu0 %vm351_vm0, %v336_v20 }
  0x9b   : > { %v590_v36 = vpop.permute.xlu1 %589 }
  0x9d   : > { %v337_v21 = vpop.trf.xlu0 }
  0x9e   : > { %910 = vmatprep.mubr.msk.f32.mxu0 %vm351_vm0, %v337_v21 }
  0x9f   : > { %v595_v37 = vpop.permute.xlu1 %594 }
  0xa1   : > { %v338_v22 = vpop.trf.xlu0 }
  0xa2   : > { %911 = vmatmul.mubr.msk.f32.gmra.mxu0 %vm351_vm0, %v338_v22 }
  0xa3   : > { %v600_v38 = vpop.permute.xlu1 %599 }
  0xa5   : > { %v339_v23 = vpop.trf.xlu0 }
  0xa6   : > { %913 = vmatprep.mubr.msk.f32.mxu0 %vm351_vm0, %v339_v23 }
  0xa7   : > { %v605_v39 = vpop.permute.xlu1 %604 }
  0xa9   : > { %v340_v24 = vpop.trf.xlu0 }
  0xaa   : > { %914 = vmatmul.mubr.msk.f32.gmra.mxu0 %vm351_vm0, %v340_v24 }
  0xab   : > { %v610_v47 = vpop.permute.xlu1 %609 }
  0xad   : > { %v341_v25 = vpop.trf.xlu0 }
  0xae   : > { %916 = vmatprep.mubr.msk.f32.mxu0 %vm351_vm0, %v341_v25 }
  0xaf   : > { %v615_v53 = vpop.permute.xlu1 %614 }
  0xb1   : > { %v342_v26 = vpop.trf.xlu0 }
  0xb2   : > { %917 = vmatmul.mubr.msk.f32.gmra.mxu0 %vm351_vm0, %v342_v26 }
  0xb3   : > { %v620_v60 = vpop.permute.xlu1 %619 }
  0xb5   : > { %v343_v27 = vpop.trf.xlu0 }
  0xb6   : > { %919 = vmatprep.mubr.msk.f32.mxu1 %vm351_vm0, %v343_v27 }
  0xb7   : > { %v625_v4 = vpop.permute.xlu1 %624 }
  0xb9   : > { %v344_v28 = vpop.trf.xlu0 }
  0xba   : > { %920 = vmatmul.mubr.msk.f32.vlgmr.msra.gmra.mxu1 %vm351_vm0, %v344_v28 }
  0xbb   : > { %v630_v11 = vpop.permute.xlu1 %629 }
  0xbd   : > { %v345_v29 = vpop.trf.xlu0 }
  0xbe   : > { %922 = vmatprep.mubr.msk.f32.mxu1 %vm351_vm0, %v345_v29 }
  0xbf   : > { %v635_v17 = vpop.permute.xlu1 %634 }
  0xc1   : > { %v346_v30 = vpop.trf.xlu0 }
  0xc2   : > { %923 = vmatmul.mubr.msk.f32.gmra.mxu1 %vm351_vm0, %v346_v30 }
  0xc3   : > { %v640_v24 = vpop.permute.xlu1 %639 }
  0xc5   : > { %v347_v31 = vpop.trf.xlu0 }
  0xc6   : > { %925 = vmatprep.mubr.msk.f32.mxu1 %vm351_vm0, %v347_v31 }
  0xc9   : > { %v348_v32 = vpop.trf.xlu0 }
  0xca   : > { %926 = vmatmul.mubr.msk.f32.gmra.mxu1 %vm351_vm0, %v348_v32  ;;  %v645_v32 = vpop.permute.xlu1 %644 }
  0xcd   : > { %v349_v33 = vpop.trf.xlu0 }
  0xce   : > { %928 = vmatprep.mubr.msk.f32.mxu1 %vm351_vm0, %v349_v33 }
  0xd1   : > { %v350_v34 = vpop.trf.xlu0 }
  0xd2   : > { %929 = vmatmul.mubr.msk.f32.gmra.mxu1 %vm351_vm0, %v350_v34 }
  0xf9   : > { %v580_v44 = vpop.permute.xlu0 %579 }
 0x15a   : > { %v909_v40 = vpop.f32.mrf.mxu0 }
 0x15b   : > { %v546_v41 = vmul.f32 2.0, %v909_v40 }
 0x15c   : > { %v466_v43 = vpop.f32.mrf.mxu0 }
 0x15d   : > { %v658_v45 = vsub.f32 %v546_v41, %v585_v35  ;;  %v545_v46 = vmul.f32 2.0, %v466_v43 }
 0x15f   : > { %v681_v48 = vsub.f32 %v658_v45, %v1212_v42  ;;  %v657_v49 = vsub.f32 %v545_v46, %v580_v44 }
 0x161   : > { %697 = vst [vmem:[%s1215_s5 + $0x8] sm:$0xff] %v681_v48  ;;  %v680_v50 = vsub.f32 %v657_v49, %v1212_v42 }
 0x162   : > { %v912_v51 = vpop.f32.mrf.mxu0 }
 0x163   : > { %696 = vst [vmem:[%s1215_s5] sm:$0xff] %v680_v50  ;;  %v548_v52 = vmul.f32 2.0, %v912_v51 }
 0x164   : > { %v476_v54 = vpop.f32.mrf.mxu0 }
 0x165   : > { %v660_v55 = vsub.f32 %v548_v52, %v595_v37  ;;  %v547_v56 = vmul.f32 2.0, %v476_v54 }
 0x167   : > { %v683_v57 = vsub.f32 %v660_v55, %v1212_v42  ;;  %v659_v58 = vsub.f32 %v547_v56, %v590_v36 }
 0x169   : > { %699 = vst [vmem:[%s1215_s5 + $0x18] sm:$0xff] %v683_v57  ;;  %v682_v59 = vsub.f32 %v659_v58, %v1212_v42 }
 0x16a   : > { %v915_v61 = vpop.f32.mrf.mxu0 }
 0x16b   : > { %698 = vst [vmem:[%s1215_s5 + $0x10] sm:$0xff] %v682_v59  ;;  %v550_v62 = vmul.f32 2.0, %v915_v61 }
 0x16c   : > { %v486_v63 = vpop.f32.mrf.mxu0 }
 0x16d   : > { %v662_v0 = vsub.f32 %v550_v62, %v605_v39  ;;  %v549_v1 = vmul.f32 2.0, %v486_v63  ;;  %v650_v39 = vpop.permute.xlu1 %649 }
 0x16f   : > { %v685_v2 = vsub.f32 %v662_v0, %v1212_v42  ;;  %v661_v3 = vsub.f32 %v549_v1, %v600_v38 }
 0x171   : > { %701 = vst [vmem:[%s1215_s5 + $0x28] sm:$0xff] %v685_v2  ;;  %v684_v5 = vsub.f32 %v661_v3, %v1212_v42  ;;  %v655_v46 = vpop.permute.xlu1 %654 }
 0x172   : > { %v918_v6 = vpop.f32.mrf.mxu0 }
 0x173   : > { %700 = vst [vmem:[%s1215_s5 + $0x20] sm:$0xff] %v684_v5  ;;  %v552_v7 = vmul.f32 2.0, %v918_v6 }
 0x174   : > { %v496_v8 = vpop.f32.mrf.mxu0 }
 0x175   : > { %v664_v9 = vsub.f32 %v552_v7, %v615_v53  ;;  %v551_v10 = vmul.f32 2.0, %v496_v8 }
 0x177   : > { %v687_v12 = vsub.f32 %v664_v9, %v1212_v42  ;;  %v663_v13 = vsub.f32 %v551_v10, %v610_v47 }
 0x179   : > { %703 = vst [vmem:[%s1215_s5 + $0x38] sm:$0xff] %v687_v12  ;;  %v686_v14 = vsub.f32 %v663_v13, %v1212_v42 }
 0x17a   : > { %v921_v15 = vpop.f32.mrf.mxu1 }
 0x17b   : > { %702 = vst [vmem:[%s1215_s5 + $0x30] sm:$0xff] %v686_v14  ;;  %v554_v16 = vmul.f32 2.0, %v921_v15 }
 0x17c   : > { %v506_v18 = vpop.f32.mrf.mxu1 }
 0x17d   : > { %v666_v19 = vsub.f32 %v554_v16, %v625_v4  ;;  %v553_v20 = vmul.f32 2.0, %v506_v18 }
 0x17f   : > { %v689_v21 = vsub.f32 %v666_v19, %v1212_v42  ;;  %v665_v22 = vsub.f32 %v553_v20, %v620_v60 }
 0x181   : > { %705 = vst [vmem:[%s1215_s5 + $0x48] sm:$0xff] %v689_v21  ;;  %v688_v23 = vsub.f32 %v665_v22, %v1212_v42 }
 0x182   : > { %v924_v25 = vpop.f32.mrf.mxu1 }
 0x183   : > { %704 = vst [vmem:[%s1215_s5 + $0x40] sm:$0xff] %v688_v23  ;;  %v556_v26 = vmul.f32 2.0, %v924_v25 }
 0x184   : > { %v516_v27 = vpop.f32.mrf.mxu1 }
 0x185   : > { %v668_v28 = vsub.f32 %v556_v26, %v635_v17  ;;  %v555_v29 = vmul.f32 2.0, %v516_v27 }
 0x187   : > { %v691_v30 = vsub.f32 %v668_v28, %v1212_v42  ;;  %v667_v31 = vsub.f32 %v555_v29, %v630_v11 }
 0x189   : > { %707 = vst [vmem:[%s1215_s5 + $0x58] sm:$0xff] %v691_v30  ;;  %v690_v33 = vsub.f32 %v667_v31, %v1212_v42 }
 0x18a   : > { %v927_v34 = vpop.f32.mrf.mxu1 }
 0x18b   : > { %706 = vst [vmem:[%s1215_s5 + $0x50] sm:$0xff] %v690_v33  ;;  %v558_v35 = vmul.f32 2.0, %v927_v34 }
 0x18c   : > { %v526_v36 = vpop.f32.mrf.mxu1 }
 0x18d   : > { %v670_v37 = vsub.f32 %v558_v35, %v645_v32  ;;  %v557_v38 = vmul.f32 2.0, %v526_v36 }
 0x18f   : > { %v693_v40 = vsub.f32 %v670_v37, %v1212_v42  ;;  %v669_v41 = vsub.f32 %v557_v38, %v640_v24 }
 0x191   : > { %709 = vst [vmem:[%s1215_s5 + $0x68] sm:$0xff] %v693_v40  ;;  %v692_v43 = vsub.f32 %v669_v41, %v1212_v42 }
 0x192   : > { %v930_v44 = vpop.f32.mrf.mxu1 }
 0x193   : > { %708 = vst [vmem:[%s1215_s5 + $0x60] sm:$0xff] %v692_v43  ;;  %v560_v45 = vmul.f32 2.0, %v930_v44 }
 0x194   : > { %v536_v47 = vpop.f32.mrf.mxu1 }
 0x195   : > { %v672_v48 = vsub.f32 %v560_v45, %v655_v46  ;;  %v559_v49 = vmul.f32 2.0, %v536_v47 }
 0x197   : > { %v695_v50 = vsub.f32 %v672_v48, %v1212_v42  ;;  %v671_v51 = vsub.f32 %v559_v49, %v650_v39 }
 0x199   : > { %711 = vst [vmem:[%s1215_s5 + $0x78] sm:$0xff] %v695_v50  ;;  %v694_v52 = vsub.f32 %v671_v51, %v1212_v42 }
 0x19b   : > { %710 = vst [vmem:[%s1215_s5 + $0x70] sm:$0xff] %v694_v52 }
 0x19c   : > { %1007 = shalt.err (!%p1004_p5)
}
 0x19d   : > { %s1008_s14 = scalar_lea.hbm %s1250_s9, 2048  ;;  %s1012_s24 = scalar_lea.hbm %s1308_s4, 4096 }
 0x19e   : > { %p1009_p6 = scmp.ne.s32.totalorder %s1250_s9, %s1008_s14  ;;  %p1013_p10 = scmp.lt.s32.totalorder %s1250_s9, %s1308_s4 }
 0x19f   : > { %p1014_p11 = scmp.lt.s32.totalorder %s1012_s24, %s1008_s14 }
 0x1a0   : > { %p1010_p7 = pnand %p1009_p6, %p1141_p4 }
 0x1a1   : > { %p1015_p12 = por %p1014_p11, %p1013_p10 }
 0x1a2   : > { %p1011_p9 = pneg %p1010_p7 }
 0x1a4   : > { %p1016_p13 = pnand %p1015_p12, %p1011_p9 }
 0x1a6   : > { %1019 = shalt.err (!%p1016_p13)
}
 0x1a7   : > { %s1074_s5 = smov 128   ;;  %s1075_s29 = smov 8  }
 0x1a8   : > { %933 = dma.vmem_to_hbm [thread:$0]  (%p1141_p4), %s1252_s6, 2048, %s1250_s9, %s1259_s18, %s1074_s5, %s1074_s5, %s1075_s29  }
 0x1a9 PF: > { %p939_p0 = scmp.ge.s32.totalorder %s1070_s20, 2  ;;  %s744_s7 = sand.u32 1, %s1050_s15  }
 0x1aa   : > { %s745_s8 = scalar_lea.sflag [#allocation3], %s744_s7 }
 0x1ab   : > { %p936_p1 = pnand %p939_p0, %p1148_p8 }
 0x1ad   : > { %p937_p2 = pneg %p936_p1 }
 0x1af   : > { %1045 = dma.done.wait (%p937_p2), %s745_s8, 2048  }
 0x1b0   : > { %1047 = vsyncadd (%p937_p2), %s745_s8, 4294965248  ;;  %s17_s20 = sadd.s32 1, %s1070_s20   ;;  %s1311_s15 = smov %s1054_s16 }
 0x1b1   : > { %p14_p3 = scmp.ge.s32.totalorder %s17_s20, 4   ;;  %s1312_s16 = smov %s1058_s17 }
 0x1b2   : > { %s1313_s17 = smov %s1154_s28  ;;  %s1314_s18 = smov %s1066_s19 }
 0x1b3   : > { %s1315_s19 = smov %s1317_s23  ;;  %16 = sbr.rel (!%p14_p3) target bundleno = 4 (0x4), region = 80 }
 0x1b8   :  { %750 = vsyncpa [#allocation3], 1 }
 0x1b9   :  { %752 = vsyncpa [#allocation3 + $0x1], 1 }

</bundles_post_ra>
